<compile_context>
chip_gen: v7x
topology: tpu7x:2x2x1
jax: 0.10.0
libtpu: 0.0.40
codegen_flags: <defaults>
</compile_context>

<pallas_src>
import jax
import jax.numpy as jnp
from jax.experimental import pallas as pl
from jax.experimental.pallas import tpu as pltpu

LANES = 128


def _round_up(x, m):
    return -(-x // m) * m


# ---------------------------------------------------------------------------
# Streaming seg-head kernel:  out = parent_tile @ W1 + gathered_tile
# (gathered_tile already contains child_feat @ W2 + b for the matching child row)
# ---------------------------------------------------------------------------
def seg_head_kernel(parent_ref, gathered_ref, w1_ref, out_ref):
    acc = jnp.dot(parent_ref[...].astype(jnp.float32),
                  w1_ref[...].astype(jnp.float32),
                  preferred_element_type=jnp.float32)
    out_ref[...] = (acc + gathered_ref[...].astype(jnp.float32)).astype(out_ref.dtype)


def default_segmentor_v2_forward(parent_feat, child_feat, inverse, w, b, *, tm=1024):
    """seg_logits for DefaultSegmentorV2.forward (inference, no 'segment' key).

    parent_feat: (Np, C1) float32   -- point.pop('pooling_parent').feat
    child_feat:  (Nc, C2) float32   -- point.feat (pooled level)
    inverse:     (Np,)    int32     -- pooling_inverse  (0 <= inverse < Nc)
    w:           (C1+C2, num_classes) float32  (== seg_head.weight.T)
    b:           (num_classes,)       float32
    returns:     (Np, num_classes) float32 seg_logits
    """
    Np, C1 = parent_feat.shape
    Nc, C2 = child_feat.shape
    ncls = w.shape[1]
    ncls_pad = _round_up(ncls, LANES)

    # lane-pad the class dimension with zero columns (weights only; sliced off at the end)
    w_pad = jnp.zeros((C1 + C2, ncls_pad), jnp.float32).at[:, :ncls].set(
        w.astype(jnp.float32))
    w1 = w_pad[:C1]                                         # (C1, ncls_pad)
    w2 = w_pad[C1:]                                         # (C2, ncls_pad)
    b_pad = jnp.zeros((ncls_pad,), jnp.float32).at[:ncls].set(b.astype(jnp.float32))

    # ---- once, plain XLA: pooled-level logits (+ bias) and HBM gather to parent level ----
    child_logits = child_feat.astype(jnp.float32) @ w2 + b_pad              # (Nc, ncls_pad)
    gathered = jnp.take(child_logits, inverse.astype(jnp.int32), axis=0)    # (Np, ncls_pad)

    # ---- Pallas: stream parent rows, fuse parent@W1 with the unpooled contribution ----
    tm_eff = min(tm, _round_up(Np, 8))          # big tiles; shrinks for tiny inputs
    grid = (pl.cdiv(Np, tm_eff),)               # edge block masked by Pallas, no padding

    out = pl.pallas_call(
        seg_head_kernel,
        out_shape=jax.ShapeDtypeStruct((Np, ncls_pad), jnp.float32),
        grid_spec=pltpu.PrefetchScalarGridSpec(
            num_scalar_prefetch=0,
            grid=grid,
            in_specs=[
                pl.BlockSpec((tm_eff, C1), lambda i: (i, 0)),        # parent feat tile
                pl.BlockSpec((tm_eff, ncls_pad), lambda i: (i, 0)),  # gathered child logits
                pl.BlockSpec((C1, ncls_pad), lambda i: (0, 0)),      # W1 (invariant, 16 KiB)
            ],
            out_specs=pl.BlockSpec((tm_eff, ncls_pad), lambda i: (i, 0)),
        ),
        compiler_params=pltpu.CompilerParams(
            dimension_semantics=("parallel",),   # row grid shards across v7x's 2 TCs
            vmem_limit_bytes=48 << 20),          # safe on v7x (64 MiB/TC); tiny usage anyway
    )(parent_feat.astype(jnp.float32), gathered, w1)

    return out[:, :ncls]


if __name__ == "__main__":
    key = jax.random.PRNGKey(0)
    k_parent, k_child, k_inv, k_w, k_b = jax.random.split(key, 5)

    # small synthetic shapes
    Np, C1 = 16, 32          # parent level: 16 points, 32 channels
    Nc, C2 = 8, 32           # pooled (child) level: 8 points, 32 channels
    backbone_out_channels = C1 + C2   # = 64 (feat dim after the unpool concat)
    num_classes = 13

    # synthetic "backbone" output (deterministic)
    parent_feat = jax.random.normal(k_parent, (Np, C1), dtype=jnp.float32)
    child_feat = jax.random.normal(k_child, (Nc, C2), dtype=jnp.float32)
    inverse = jax.random.randint(k_inv, (Np,), 0, Nc, dtype=jnp.int32)

    # seg_head = nn.Linear(backbone_out_channels, num_classes), deterministic init
    bound = 1.0 / jnp.sqrt(backbone_out_channels)
    w = jax.random.uniform(k_w, (backbone_out_channels, num_classes),
                           minval=-bound, maxval=bound, dtype=jnp.float32)
    b = jax.random.uniform(k_b, (num_classes,),
                           minval=-bound, maxval=bound, dtype=jnp.float32)

    seg_logits = default_segmentor_v2_forward(parent_feat, child_feat, inverse, w, b)
    seg_logits = jax.block_until_ready(seg_logits)

    # pure-JAX reference of the same forward semantics
    feat_ref = jnp.concatenate([parent_feat, child_feat[inverse]], axis=-1)
    logits_ref = feat_ref @ w + b
    assert seg_logits.shape == (Np, num_classes)
    assert jnp.allclose(seg_logits, logits_ref, atol=2e-4, rtol=2e-4)

    print("KERNEL_OK")
</pallas_src>

<mosaic_0001>
module attributes {stable_mosaic.version = 11 : i64} {
  func.func @seg_head_kernel(%arg0: i32, %arg1: memref<16x32xf32, #tpu.memory_space<vmem>>, %arg2: memref<16x128xf32, #tpu.memory_space<vmem>>, %arg3: memref<32x128xf32, #tpu.memory_space<vmem>>, %arg4: memref<16x128xf32, #tpu.memory_space<vmem>>) attributes {dimension_semantics = [#tpu.dimension_semantics<parallel>], iteration_bounds = array<i64: 1>, scalar_prefetch = 0 : i64, scratch_operands = 0 : i64, tpu.core_type = #tpu.core_type<tc>, window_params = [{transform_indices = @transform_0, window_bounds = array<i64: 16, 32>}, {transform_indices = @transform_1, window_bounds = array<i64: 16, 128>}, {pipeline_mode = #tpu.pipeline_mode<synchronous>, transform_indices = @transform_2, window_bounds = array<i64: 32, 128>}, {transform_indices = @transform_3, window_bounds = array<i64: 16, 128>}]} {
    %c0 = arith.constant 0 : index
    %c0_0 = arith.constant 0 : index
    %0 = vector.load %arg1[%c0, %c0_0] : memref<16x32xf32, #tpu.memory_space<vmem>>, vector<16x32xf32>
    %c0_1 = arith.constant 0 : index
    %c0_2 = arith.constant 0 : index
    %1 = vector.load %arg3[%c0_1, %c0_2] : memref<32x128xf32, #tpu.memory_space<vmem>>, vector<32x128xf32>
    %cst = arith.constant dense<0.000000e+00> : vector<16x128xf32>
    %2 = tpu.matmul %0, %1, %cst {dimension_numbers = #tpu.dot_dimension_numbers<[1], [0], [0], [1], [0, 0, 1, 1], [], []>} : vector<16x32xf32>, vector<32x128xf32>, vector<16x128xf32> -> vector<16x128xf32>
    %c0_3 = arith.constant 0 : index
    %c0_4 = arith.constant 0 : index
    %3 = vector.load %arg2[%c0_3, %c0_4] : memref<16x128xf32, #tpu.memory_space<vmem>>, vector<16x128xf32>
    %4 = arith.addf %2, %3 : vector<16x128xf32>
    %c0_5 = arith.constant 0 : index
    %c0_6 = arith.constant 0 : index
    %5 = vector.load %arg4[%c0_5, %c0_6] : memref<16x128xf32, #tpu.memory_space<vmem>>, vector<16x128xf32>
    tpu.vector_store %arg4[%c0_5, %c0_6], %4 {strides = array<i32>} : memref<16x128xf32, #tpu.memory_space<vmem>>, vector<16x128xf32>,
    return
  }
  func.func @transform_0(%arg0: i32) -> (i32, i32) {
    %c0_i32 = arith.constant 0 : i32
    %c0_i32_0 = arith.constant 0 : i32
    return %arg0, %c0_i32 : i32, i32
  }
  func.func @transform_1(%arg0: i32) -> (i32, i32) {
    %c0_i32 = arith.constant 0 : i32
    %c0_i32_0 = arith.constant 0 : i32
    return %arg0, %c0_i32 : i32, i32
  }
  func.func @transform_2(%arg0: i32) -> (i32, i32) {
    %c0_i32 = arith.constant 0 : i32
    %c0_i32_0 = arith.constant 0 : i32
    %c0_i32_1 = arith.constant 0 : i32
    return %c0_i32, %c0_i32_0 : i32, i32
  }
  func.func @transform_3(%arg0: i32) -> (i32, i32) {
    %c0_i32 = arith.constant 0 : i32
    %c0_i32_0 = arith.constant 0 : i32
    return %arg0, %c0_i32 : i32, i32
  }
}

</mosaic_0001>

<bundles_post_ra>
// kernel: tpu_custom_call.1
= control target key start
LH: loop header
LB: loop body
LE: loop exit
PB: predicated region body
PF: predicated region fallthrough
CT: control target
= control target key end

     0   :  { %8 = vsyncpa [#allocation3], 0  ;;  %s386_s0 = inlined_call_operand.hbm [shape: f32[16,32], index: 0, kind: input, shape index: {}]   ;;  %s387_s1 = inlined_call_operand.hbm [shape: f32[16,128], index: 1, kind: input, shape index: {}]   ;;  %s388_s2 = inlined_call_operand.hbm [shape: f32[32,128], index: 2, kind: input, shape index: {}]   ;;  %s389_s3 = inlined_call_operand.hbm [shape: f32[16,128], index: 3, kind: output, shape index: {}]  }
   0x1   :  { %9 = vsyncpa [#allocation6], 0 }
   0x2   :  { %10 = vsyncpa [#allocation4], 0  ;;  %s293_s12 = smov [#allocation5]   ;;  %s294_s14 = smov [#allocation2]  }
   0x3   :  { %s28_s13 = sshll.u32 %s293_s12, 4  ;;  %s16_s15 = sshll.u32 %s294_s14, 4  ;;  %s29_s13 = int_to_ptr.vmem [resolvable:$true] %s28_s13  ;;  %s319_s15 = int_to_ptr.vmem [resolvable:$true] %s16_s15 }
   0x4   :  { %s199_s18 = scalar_lea.hbm %s387_s1, 256 }
   0x5   :  { %p200_p0 = scmp.ne.s32.totalorder %s387_s1, %s199_s18  ;;  %p203_p1 = scmp.lt.u32.totalorder %s199_s18, %s387_s1 }
   0x7   :  { %p205_p2 = pnand %p203_p1, %p200_p0 }
   0x9   :  { %208 = shalt.err (!%p205_p2)
}
   0xa   :  { %s209_s23 = scalar_lea.vmem %s29_s13, 256  ;;  %p214_p4 = scmp.lt.s32.totalorder %s29_s13, %s29_s13 }
   0xb   :  { %p210_p3 = scmp.ne.s32.totalorder %s29_s13, %s209_s23  ;;  %p215_p5 = scmp.lt.s32.totalorder %s209_s23, %s209_s23 }
   0xd   :  { %p216_p6 = por %p215_p5, %p214_p4 }
   0xf   :  { %p217_p7 = pnand %p216_p6, %p210_p3 }
  0x11   :  { %220 = shalt.err (!%p217_p7)
}
  0x12   :  { %s295_s24 = smov 128   ;;  %s296_s25 = smov 8  }
  0x13   :  { %34 = dma.hbm_to_vmem [thread:$0]  %s387_s1, 256, %s29_s13, [#allocation6], %s295_s24, %s295_s24, %s296_s25  }
  0x14   :  { %s221_s30 = scalar_lea.hbm %s386_s0, 256 }
  0x15   :  { %p222_p8 = scmp.ne.s32.totalorder %s386_s0, %s221_s30  ;;  %p225_p9 = scmp.lt.u32.totalorder %s221_s30, %s386_s0 }
  0x17   :  { %p227_p10 = pnand %p225_p9, %p222_p8 }
  0x19   :  { %230 = shalt.err (!%p227_p10)
}
  0x1a   :  { %s231_s8 = scalar_lea.vmem %s319_s15, 256  ;;  %p236_p12 = scmp.lt.s32.totalorder %s319_s15, %s319_s15 }
  0x1b   :  { %p232_p11 = scmp.ne.s32.totalorder %s319_s15, %s231_s8  ;;  %p237_p13 = scmp.lt.s32.totalorder %s231_s8, %s231_s8 }
  0x1d   :  { %p238_p0 = por %p237_p13, %p236_p12 }
  0x1f   :  { %p239_p1 = pnand %p238_p0, %p232_p11 }
  0x21   :  { %242 = shalt.err (!%p239_p1)
}
  0x22   :  { %22 = dma.hbm_to_vmem [thread:$0]  %s386_s0, 256, %s319_s15, [#allocation3], %s295_s24, %s295_s24, %s296_s25  }
  0x23   :  { %s297_s10 = smov [#allocation7]   ;;  %s243_s14 = scalar_lea.hbm %s388_s2, 512 }
  0x24   :  { %s40_s11 = sshll.u32 %s297_s10, 4  ;;  %p244_p2 = scmp.ne.s32.totalorder %s388_s2, %s243_s14  ;;  %s41_s11 = int_to_ptr.vmem [resolvable:$true] %s40_s11 }
  0x25   :  { %p247_p3 = scmp.lt.u32.totalorder %s243_s14, %s388_s2 }
  0x27   :  { %p249_p4 = pnand %p247_p3, %p244_p2 }
  0x29   :  { %252 = shalt.err (!%p249_p4)
}
  0x2a   :  { %s253_s20 = scalar_lea.vmem %s41_s11, 512  ;;  %p258_p6 = scmp.lt.s32.totalorder %s41_s11, %s41_s11 }
  0x2b   :  { %p254_p5 = scmp.ne.s32.totalorder %s41_s11, %s253_s20  ;;  %p259_p7 = scmp.lt.s32.totalorder %s253_s20, %s253_s20 }
  0x2d   :  { %p260_p8 = por %p259_p7, %p258_p6 }
  0x2f   :  { %p261_p9 = pnand %p260_p8, %p254_p5 }
  0x31   :  { %264 = shalt.err (!%p261_p9)
}
  0x32   :  { %46 = dma.hbm_to_vmem [thread:$0]  %s388_s2, 512, %s41_s11, [#allocation6], %s295_s24, %s295_s24, %s296_s25  }
  0x33   :  { %287 = dma.done.wait [#allocation3], 256  }
  0x34   :  { %288 = vsyncadd [#allocation3], 4294967040 }
  0x35   :  { %289 = dma.done.wait [#allocation6], 768  }
  0x36   :  { %290 = vsyncadd [#allocation6], 4294966528  ;;  %vm64_vm0 = vcmask 261120   ;;  %v58_v0 = vld [vmem:[#allocation7] sm:$0xff]  ;;  %v59_v1 = vld [vmem:[#allocation7 + $0x8] sm:$0xff]  ;;  %s298_s2 = smov [#allocation8]  }
  0x37   :  { %v60_v2 = vld [vmem:[#allocation7 + $0x10] sm:$0xff]  ;;  %v185_v3 = vpack.c.bf16 %v59_v1, %v58_v0  ;;  %v61_v4 = vld [vmem:[#allocation7 + $0x18] sm:$0xff]  ;;  %v56_v5 = vld [vmem:[#allocation2] sm:$0xff]  ;;  %s153_s21 = sshll.u32 %s298_s2, 4  ;;  %s154_s21 = int_to_ptr.vmem [resolvable:$true] %s153_s21 }
  0x38   :  { %v189_v6 = vpack.c.bf16 %v61_v4, %v60_v2  ;;  %182 = vmatprep.mubr.msk.f32.mxu0 %vm64_vm0, %v56_v5  ;;  %v57_v7 = vld [vmem:[#allocation2 + $0x8] sm:$0xff]  ;;  %v63_v8 = vld [vmem:[#allocation5 + $0x8] sm:$0xff]  ;;  %v62_v9 = vld [vmem:[#allocation5] sm:$0xff]  ;;  %s265_s22 = scalar_lea.vmem %s154_s21, 256  ;;  %p270_p11 = scmp.lt.s32.totalorder %s154_s21, %s154_s21 }
  0x39   :  { %186 = vmatprep.subr.bf16.mxu0 %v185_v3  ;;  %p266_p10 = scmp.ne.s32.totalorder %s154_s21, %s265_s22  ;;  %p271_p12 = scmp.lt.s32.totalorder %s265_s22, %s265_s22 }
  0x3a   :  { %188 = vmatpush3.bf16.msra.mxu0 %v185_v3 }
  0x3b   :  { %190 = vmatprep.subr.bf16.mxu0 %v189_v6  ;;  %p272_p13 = por %p271_p12, %p270_p11 }
  0x3d   :  { %p273_p0 = pnand %p272_p13, %p266_p10 }
  0x3e   :  { %192 = vmatpush3.bf16.msra.mxu0 %v189_v6 }
  0x41   :  { %183 = vmatmul.mubr.msk.f32.vlgmr.msra.gmra.mrb[0].mxu0 %vm64_vm0, %v57_v7 }
 0x114   :  { %v184_v10 = vpop.f32.mrb[0].mxu0 }
 0x115   :  { %v143_v11 = vadd.f32 %v184_v10, %v63_v8  ;;  %v137_v12 = vpop.f32.mrb[1].mxu0 }
 0x116   :  { %v138_v13 = vadd.f32 %v137_v12, %v62_v9 }
 0x117   :  { %147 = vst [vmem:[#allocation8 + $0x8] sm:$0xff] %v143_v11 }
 0x118   :  { %146 = vst [vmem:[#allocation8] sm:$0xff] %v138_v13 }
 0x119   :  { %276 = shalt.err (!%p273_p0)
}
 0x11a   :  { %s277_s27 = scalar_lea.hbm %s389_s3, 256 }
 0x11b   :  { %p278_p1 = scmp.ne.s32.totalorder %s389_s3, %s277_s27  ;;  %p281_p2 = scmp.lt.u32.totalorder %s277_s27, %s389_s3 }
 0x11d   :  { %p283_p3 = pnand %p281_p2, %p278_p1 }
 0x11f   :  { %286 = shalt.err (!%p283_p3)
}
 0x120   :  { %159 = dma.vmem_to_hbm [thread:$0]  %s154_s21, 256, %s389_s3, [#allocation4], %s295_s24, %s295_s24, %s296_s25  }
 0x121   :  { %291 = dma.done.wait [#allocation4], 256  }
 0x122   :  { %292 = vsyncadd [#allocation4], 4294967040 }
 0x123   :  { %163 = vsyncpa [#allocation3], 1 }
 0x124   :  { %164 = vsyncpa [#allocation6], 1 }
 0x125   :  { %165 = vsyncpa [#allocation4], 1 }

</bundles_post_ra>
